<compile_context>
chip_gen: v6e
topology: v6e:2x2x1
jax: 0.10.0
libtpu: 0.0.40
codegen_flags: <defaults>
</compile_context>

<pallas_src>
import jax
import jax.numpy as jnp
from jax.experimental import pallas as pl
from jax.experimental.pallas import tpu as pltpu

_INV_SQRT2 = 0.7071067811865476  # 1/sqrt(2), hoisted for the exact erf GELU


def _mlp_kernel(x_ref, w1_ref, b1_ref, w2_ref, b2_ref, o_ref):
    # x_ref : (Nb, C_in,  TM)    pixels-in-lanes
    # w1_ref: (C_mid, C_in)      b1_ref: (C_mid, 1)
    # w2_ref: (C_out, C_mid)     b2_ref: (C_out, 1)
    # o_ref : (Nb, C_out, TM)
    w1 = w1_ref[...]
    w2 = w2_ref[...]
    b1 = b1_ref[...].astype(jnp.float32)
    b2 = b2_ref[...].astype(jnp.float32)
    nb = x_ref.shape[0]
    for b in range(nb):  # static unroll over the (small) batch sub-block
        xb = x_ref[b]                                             # (C_in, TM)
        h = jnp.dot(w1, xb, preferred_element_type=jnp.float32) + b1
        # PyTorch F.gelu default = exact (erf-based) GELU, computed in f32.
        h = 0.5 * h * (1.0 + jax.lax.erf(h * _INV_SQRT2))
        y = jnp.dot(w2, h, preferred_element_type=jnp.float32) + b2
        o_ref[b] = y.astype(o_ref.dtype)


def _largest_divisor_leq(n, cap):
    cap = max(1, min(n, cap))
    for d in range(cap, 0, -1):
        if n % d == 0:
            return d
    return 1


def _choose_tiling(N, Mp, C_in, C_mid, C_out, itemsize, *,
                   max_tile=4096, target_step_bytes=512 * 1024,
                   max_nb=8, block_budget=20 << 20):
    """Pick (tile_m, Nb) so one grid step carries ~target_step_bytes of x while
    the double-buffered blocks + f32 GELU intermediate fit in block_budget."""

    def tile_for(cap):
        t = max(128, min(Mp, (cap // 128) * 128))
        while Mp % t != 0:
            t -= 128
        return t

    tile_m = tile_for(max_tile)
    # Keep the (C_mid, tile_m) f32 intermediate within half the budget.
    while C_mid * tile_m * 4 > block_budget // 2 and tile_m > 128:
        tile_m = tile_for(tile_m - 128)

    w_bytes = (C_mid * C_in + C_mid + C_out * C_mid + C_out) * 4
    io_per_batch = 2 * tile_m * itemsize * (C_in + C_out)   # double-buffered I/O
    h_bytes = C_mid * tile_m * 4
    avail = max(block_budget - h_bytes - 2 * w_bytes, io_per_batch)
    nb_vmem = max(1, avail // io_per_batch)
    nb_target = max(1, -(-target_step_bytes // (C_in * tile_m * itemsize)))
    Nb = _largest_divisor_leq(N, int(min(nb_vmem, nb_target, max_nb)))

    # v7x has 2 TensorCores sharded over the parallel grid axes: guarantee at
    # least 2 grid steps when the problem size allows it.
    if (N // Nb) * (Mp // tile_m) < 2:
        if Nb % 2 == 0:
            Nb //= 2
        elif Mp // tile_m == 1 and tile_m % 256 == 0:
            tile_m //= 2
    return tile_m, Nb


def mlp_pallas(x_nchw, w1, b1, w2, b2, *,
               max_tile=4096, target_step_bytes=512 * 1024):
    """x_nchw: (N, C_in, H, W); w1: (C_mid, C_in); b1: (C_mid,);
    w2: (C_out, C_mid); b2: (C_out,). Returns (N, C_out, H, W)."""
    N, C_in, H, W = x_nchw.shape
    C_mid = w1.shape[0]
    C_out = w2.shape[0]
    M = H * W

    # Free reshape: NCHW is already (N, C, H*W) contiguous.
    x3d = x_nchw.reshape(N, C_in, M)

    # Lane-align the pixel axis so stores are unmasked and the block size is
    # bounded even for large, 128-unaligned H*W.
    Mp = -(-M // 128) * 128
    if Mp != M:
        x3d = jnp.pad(x3d, ((0, 0), (0, 0), (0, Mp - M)))

    itemsize = jnp.dtype(x_nchw.dtype).itemsize
    tile_m, Nb = _choose_tiling(N, Mp, C_in, C_mid, C_out, itemsize,
                                max_tile=max_tile,
                                target_step_bytes=target_step_bytes)
    grid = (N // Nb, Mp // tile_m)

    b1c = b1.reshape(C_mid, 1)
    b2c = b2.reshape(C_out, 1)

    # Explicit scoped-VMEM limit: covers the double-buffered blocks plus the
    # f32 GELU intermediate, capped well under v7x's 64 MiB physical VMEM.
    needed = (2 * Nb * tile_m * itemsize * (C_in + C_out)
              + C_mid * tile_m * 4
              + 2 * (C_mid * C_in + C_mid + C_out * C_mid + C_out) * 4)
    vmem_limit = int(min(max(2 * needed, 32 << 20), 48 << 20))

    out3d = pl.pallas_call(
        _mlp_kernel,
        out_shape=jax.ShapeDtypeStruct((N, C_out, Mp), x_nchw.dtype),
        grid_spec=pltpu.PrefetchScalarGridSpec(
            num_scalar_prefetch=0,
            grid=grid,
            in_specs=[
                pl.BlockSpec((Nb, C_in, tile_m), lambda n, m: (n, 0, m)),
                pl.BlockSpec((C_mid, C_in), lambda n, m: (0, 0)),
                pl.BlockSpec((C_mid, 1), lambda n, m: (0, 0)),
                pl.BlockSpec((C_out, C_mid), lambda n, m: (0, 0)),
                pl.BlockSpec((C_out, 1), lambda n, m: (0, 0)),
            ],
            out_specs=pl.BlockSpec((Nb, C_out, tile_m), lambda n, m: (n, 0, m)),
        ),
        compiler_params=pltpu.CompilerParams(
            dimension_semantics=("parallel", "parallel"),
            vmem_limit_bytes=vmem_limit,
        ),
    )(x3d, w1, b1c, w2, b2c)

    if Mp != M:
        out3d = out3d[:, :, :M]
    return out3d.reshape(N, C_out, H, W)


def _reference(x_nchw, w1, b1, w2, b2):
    xf = x_nchw.astype(jnp.float32)
    h = jnp.einsum("oi,nihw->nohw", w1.astype(jnp.float32), xf)
    h = h + b1.reshape(1, -1, 1, 1).astype(jnp.float32)
    h = 0.5 * h * (1.0 + jax.lax.erf(h * _INV_SQRT2))
    y = jnp.einsum("oi,nihw->nohw", w2.astype(jnp.float32), h)
    y = y + b2.reshape(1, -1, 1, 1).astype(jnp.float32)
    return y.astype(x_nchw.dtype)


if __name__ == "__main__":
    # Module config: MLP(in_channels=4, out_channels=4, mid_channels=32)
    N, C_in, H, W = 2, 4, 16, 16
    C_mid, C_out = 32, 4

    key = jax.random.PRNGKey(0)
    kx, kw1, kb1, kw2, kb2 = jax.random.split(key, 5)

    x = jax.random.normal(kx, (N, C_in, H, W), dtype=jnp.float32)

    # Conv2d(1x1)-style parameters: weight (out_ch, in_ch), bias (out_ch,)
    bound1 = 1.0 / jnp.sqrt(jnp.float32(C_in))
    w1 = jax.random.uniform(kw1, (C_mid, C_in), jnp.float32, -bound1, bound1)
    b1 = jax.random.uniform(kb1, (C_mid,), jnp.float32, -bound1, bound1)
    bound2 = 1.0 / jnp.sqrt(jnp.float32(C_mid))
    w2 = jax.random.uniform(kw2, (C_out, C_mid), jnp.float32, -bound2, bound2)
    b2 = jax.random.uniform(kb2, (C_out,), jnp.float32, -bound2, bound2)

    out = jax.block_until_ready(mlp_pallas(x, w1, b1, w2, b2))
    ref = _reference(x, w1, b1, w2, b2)
    assert out.shape == (N, C_out, H, W)
    assert jnp.allclose(out, ref, atol=1e-5, rtol=1e-5)

    # Extra check: a 128-unaligned spatial plane exercises the lane-pad path.
    x2 = jax.random.normal(jax.random.PRNGKey(1), (N, C_in, 10, 10), jnp.float32)
    out2 = jax.block_until_ready(mlp_pallas(x2, w1, b1, w2, b2))
    assert jnp.allclose(out2, _reference(x2, w1, b1, w2, b2), atol=1e-5, rtol=1e-5)

    print("KERNEL_OK")
</pallas_src>

<mosaic_0001>
module attributes {stable_mosaic.version = 11 : i64} {
  func.func @_mlp_kernel(%arg0: i32, %arg1: i32, %arg2: memref<1x4x256xf32, #tpu.memory_space<vmem>>, %arg3: memref<32x4xf32, #tpu.memory_space<vmem>>, %arg4: memref<32x1xf32, #tpu.memory_space<vmem>>, %arg5: memref<4x32xf32, #tpu.memory_space<vmem>>, %arg6: memref<4x1xf32, #tpu.memory_space<vmem>>, %arg7: memref<1x4x256xf32, #tpu.memory_space<vmem>>) attributes {dimension_semantics = [#tpu.dimension_semantics<parallel>, #tpu.dimension_semantics<parallel>], iteration_bounds = array<i64: 2, 1>, scalar_prefetch = 0 : i64, scratch_operands = 0 : i64, tpu.core_type = #tpu.core_type<tc>, window_params = [{transform_indices = @transform_0, window_bounds = array<i64: 1, 4, 256>}, {pipeline_mode = #tpu.pipeline_mode<synchronous>, transform_indices = @transform_1, window_bounds = array<i64: 32, 4>}, {pipeline_mode = #tpu.pipeline_mode<synchronous>, transform_indices = @transform_2, window_bounds = array<i64: 32, 1>}, {pipeline_mode = #tpu.pipeline_mode<synchronous>, transform_indices = @transform_3, window_bounds = array<i64: 4, 32>}, {pipeline_mode = #tpu.pipeline_mode<synchronous>, transform_indices = @transform_4, window_bounds = array<i64: 4, 1>}, {transform_indices = @transform_5, window_bounds = array<i64: 1, 4, 256>}]} {
    %c0 = arith.constant 0 : index
    %c0_0 = arith.constant 0 : index
    %0 = vector.load %arg3[%c0, %c0_0] : memref<32x4xf32, #tpu.memory_space<vmem>>, vector<32x4xf32>
    %c0_1 = arith.constant 0 : index
    %c0_2 = arith.constant 0 : index
    %1 = vector.load %arg5[%c0_1, %c0_2] : memref<4x32xf32, #tpu.memory_space<vmem>>, vector<4x32xf32>
    %c0_3 = arith.constant 0 : index
    %c0_4 = arith.constant 0 : index
    %2 = vector.load %arg4[%c0_3, %c0_4] : memref<32x1xf32, #tpu.memory_space<vmem>>, vector<32x1xf32>
    %c0_5 = arith.constant 0 : index
    %c0_6 = arith.constant 0 : index
    %3 = vector.load %arg6[%c0_5, %c0_6] : memref<4x1xf32, #tpu.memory_space<vmem>>, vector<4x1xf32>
    %c0_7 = arith.constant 0 : index
    %c0_8 = arith.constant 0 : index
    %c0_9 = arith.constant 0 : index
    %4 = vector.load %arg2[%c0_7, %c0_8, %c0_9] : memref<1x4x256xf32, #tpu.memory_space<vmem>>, vector<1x4x256xf32>
    %5 = vector.shape_cast %4 : vector<1x4x256xf32> to vector<4x256xf32>
    %cst = arith.constant dense<0.000000e+00> : vector<32x256xf32>
    %6 = tpu.matmul %0, %5, %cst {dimension_numbers = #tpu.dot_dimension_numbers<[1], [0], [0], [1], [0, 0, 1, 1], [], []>} : vector<32x4xf32>, vector<4x256xf32>, vector<32x256xf32> -> vector<32x256xf32>
    %7 = vector.broadcast %2 : vector<32x1xf32> to vector<32x256xf32>
    %8 = arith.addf %6, %7 : vector<32x256xf32>
    %cst_10 = arith.constant 5.000000e-01 : f32
    %9 = vector.broadcast %cst_10 : f32 to vector<32x256xf32>
    %10 = arith.mulf %9, %8 : vector<32x256xf32>
    %cst_11 = arith.constant 0.707106769 : f32
    %11 = vector.broadcast %cst_11 : f32 to vector<32x256xf32>
    %12 = arith.mulf %8, %11 : vector<32x256xf32>
    %13 = math.erf %12 : vector<32x256xf32>
    %cst_12 = arith.constant 1.000000e+00 : f32
    %14 = vector.broadcast %cst_12 : f32 to vector<32x256xf32>
    %15 = arith.addf %14, %13 : vector<32x256xf32>
    %16 = arith.mulf %10, %15 : vector<32x256xf32>
    %cst_13 = arith.constant dense<0.000000e+00> : vector<4x256xf32>
    %17 = tpu.matmul %1, %16, %cst_13 {dimension_numbers = #tpu.dot_dimension_numbers<[1], [0], [0], [1], [0, 0, 1, 1], [], []>} : vector<4x32xf32>, vector<32x256xf32>, vector<4x256xf32> -> vector<4x256xf32>
    %18 = vector.broadcast %3 : vector<4x1xf32> to vector<4x256xf32>
    %19 = arith.addf %17, %18 : vector<4x256xf32>
    %c0_14 = arith.constant 0 : index
    %c0_15 = arith.constant 0 : index
    %c0_16 = arith.constant 0 : index
    %20 = vector.load %arg7[%c0_14, %c0_15, %c0_16] : memref<1x4x256xf32, #tpu.memory_space<vmem>>, vector<1x4x256xf32>
    %21 = vector.shape_cast %20 : vector<1x4x256xf32> to vector<4x256xf32>
    %22 = vector.shape_cast %19 : vector<4x256xf32> to vector<1x4x256xf32>
    tpu.vector_store %arg7[%c0_14, %c0_15, %c0_16], %22 {strides = array<i32>} : memref<1x4x256xf32, #tpu.memory_space<vmem>>, vector<1x4x256xf32>,
    return
  }
  func.func @transform_0(%arg0: i32, %arg1: i32) -> (i32, i32, i32) {
    %c0_i32 = arith.constant 0 : i32
    %c0_i32_0 = arith.constant 0 : i32
    return %arg0, %c0_i32, %arg1 : i32, i32, i32
  }
  func.func @transform_1(%arg0: i32, %arg1: i32) -> (i32, i32) {
    %c0_i32 = arith.constant 0 : i32
    %c0_i32_0 = arith.constant 0 : i32
    %c0_i32_1 = arith.constant 0 : i32
    return %c0_i32, %c0_i32_0 : i32, i32
  }
  func.func @transform_2(%arg0: i32, %arg1: i32) -> (i32, i32) {
    %c0_i32 = arith.constant 0 : i32
    %c0_i32_0 = arith.constant 0 : i32
    %c0_i32_1 = arith.constant 0 : i32
    return %c0_i32, %c0_i32_0 : i32, i32
  }
  func.func @transform_3(%arg0: i32, %arg1: i32) -> (i32, i32) {
    %c0_i32 = arith.constant 0 : i32
    %c0_i32_0 = arith.constant 0 : i32
    %c0_i32_1 = arith.constant 0 : i32
    return %c0_i32, %c0_i32_0 : i32, i32
  }
  func.func @transform_4(%arg0: i32, %arg1: i32) -> (i32, i32) {
    %c0_i32 = arith.constant 0 : i32
    %c0_i32_0 = arith.constant 0 : i32
    %c0_i32_1 = arith.constant 0 : i32
    return %c0_i32, %c0_i32_0 : i32, i32
  }
  func.func @transform_5(%arg0: i32, %arg1: i32) -> (i32, i32, i32) {
    %c0_i32 = arith.constant 0 : i32
    %c0_i32_0 = arith.constant 0 : i32
    return %arg0, %c0_i32, %arg1 : i32, i32, i32
  }
}

</mosaic_0001>

<bundles_post_ra>
// kernel: tpu_custom_call.1
= control target key start
LH: loop header
LB: loop body
LE: loop exit
PB: predicated region body
PF: predicated region fallthrough
CT: control target
= control target key end

     0   :  { %10 = vsyncpa [#allocation3], 0  ;;  %s950_s0 = inlined_call_operand.vmem [shape: f32[2,4,256], index: 0, kind: input, shape index: {}]   ;;  %s951_s1 = inlined_call_operand.vmem [shape: f32[32,4], index: 1, kind: input, shape index: {}]   ;;  %s952_s2 = inlined_call_operand.vmem [shape: f32[32,1], index: 2, kind: input, shape index: {}]   ;;  %s953_s3 = inlined_call_operand.vmem [shape: f32[4,32], index: 3, kind: input, shape index: {}]   ;;  %s954_s4 = inlined_call_operand.vmem [shape: f32[4,1], index: 4, kind: input, shape index: {}]   ;;  %s955_s5 = inlined_call_operand.hbm [shape: f32[2,4,256], index: 5, kind: output, shape index: {}]  }
   0x1   :  { %12 = vsyncpa [#allocation3 + $0x1], 0  ;;  %s821_s18 = smov 0   ;;  %s823_s19 = smov 0  }
   0x2   :  { %s825_s20 = smov 0   ;;  %s827_s21 = smov 0  }
   0x3   :  { %s829_s22 = smov 0   ;;  %s831_s23 = smov 0  }
   0x4 LB: > { %s612_s24 = sadd.s32 4294967295, %s786_s23   ;;  %s613_s25 = sadd.s32 4294967294, %s786_s23   ;;  %s786_s23 = sphi %s831_s23, %s18_s23   ;;  %s782_s22 = sphi %s829_s22, %s962_s22   ;;  %s778_s21 = sphi %s827_s21, %s961_s21   ;;  %s774_s20 = sphi %s825_s20, %s960_s20   ;;  %s770_s19 = sphi %s823_s19, %s959_s19   ;;  %s766_s18 = sphi %s821_s18, %s958_s18  }
   0x5   : > { %s30_s26 = sadd.s32 1, %s782_s22  ;;  %s151_s27 = sadd.s32 1, %s774_s20 }
   0x6   : > { %p32_p0 = scmp.ge.s32.totalorder %s30_s26, 2  ;;  %p161_p1 = scmp.ne.s32.totalorder %s774_s20, %s770_s19 }
   0x7   : > { %p162_p2 = scmp.eq.s32.totalorder %s612_s24, 1  ;;  %p167_p3 = scmp.ne.s32.totalorder %s770_s19, %s766_s18 }
   0x8   : > { %s964_s26 = smov (%p32_p0, %s30_s26), 0  ;;  %p168_p5 = scmp.eq.s32.totalorder %s613_s25, 1 }
   0x9   : > { %p861_p4 = por %p162_p2, %p161_p1  ;;  %s146_s29 = ssub.s32 %s782_s22, %s964_s26 }
   0xa   : > { %p616_p6 = scmp.ge.s32.totalorder %s786_s23, 1  ;;  %p149_p7 = scmp.eq.s32.totalorder %s146_s29, 0 }
   0xb   : > { %p868_p8 = por %p168_p5, %p167_p3  ;;  %p211_p9 = scmp.lt.s32.totalorder %s786_s23, 3 }
   0xc   : > { %s874_s6 = scalar_select %p149_p7, %s774_s20, %s151_s27  }
   0xd   : > { %p212_p10 = pnand %p616_p6, %p211_p9 }
   0xe   : > { %p244_p11 = scmp.lt.s32.totalorder (!%p212_p10), %s778_s21, 1  ;;  %s240_s17 = sand.u32 (!%p212_p10), 1, %s770_s19  }
   0xf   : > { %215 = sbr.rel (%p212_p10) target bundleno = 479 (0x1df), region = 40  ;;  %s617_s24 = sshll.u32 (!%p212_p10), %s240_s17, 3 }
  0x10   : > { %s242_s27 = scalar_lea.vmem (!%p212_p10), [#allocation2], %s617_s24  ;;  %s520_s10 = scalar_lea.sflag (!%p212_p10), [#allocation3], %s240_s17 }
  0x11   : > { %s536_s29 = sshll.u32 (!%p212_p10), %s242_s27, 4  ;;  %s537_s29 = int_to_ptr.vmem [resolvable:$true] %s536_s29 }
  0x12   : > { %s710_s11 = scalar_lea.vmem (!%p212_p10), %s537_s29, 128 }
  0x13   : > { %p711_p12 = scmp.ne.s32.totalorder (!%p212_p10), %s537_s29, %s710_s11 }
  0x14   : > { %v788_v0 = vmov 0.0   ;;  %v260_v1 = vld [vmem:[%s952_s2 + $0x8] sm:$0xff]  ;;  %s245_s9 = scalar_select %p244_p11, %s778_s21, 1  ;;  %v789_v2 = vmov 0   ;;  %v262_v3 = vld [vmem:[%s952_s2 + $0x18] sm:$0xff]  ;;  %v259_v4 = vld [vmem:[%s952_s2] sm:$0xff] }
  0x15   : > { %369 = vmatprep.mubr.f32.mxu0 %v788_v0  ;;  %507 = vmatprep.mubr.f32.mxu1 %v788_v0  ;;  %v261_v5 = vld [vmem:[%s952_s2 + $0x10] sm:$0xff]  ;;  %vm300_vm0 = vcmask 1043456   ;;  %v254_v8 = vld [vmem:[%s951_s1] sm:$0xff]  ;;  %vm287_vm1 = vcmask 31744   ;;  %v255_v10 = vld [vmem:[%s951_s1 + $0x8] sm:$0xff]  ;;  %vm439_vm2 = vcmask 261120   ;;  %p712_p13 = pnand %p711_p12, %p861_p4 }
  0x16   : > { %692 = vset.pattern.permute.xlu1 %v789_v2  ;;  %691 = vset.pattern.permute.xlu0 %v789_v2  ;;  %s632_s12 = sshll.u32 %s245_s9, 3  ;;  %v263_v9 = vld [vmem:[%s954_s4] sm:$0xf]  ;;  %v256_v11 = vld [vmem:[%s951_s1 + $0x10] sm:$0xff]  ;;  %v257_v12 = vld [vmem:[%s951_s1 + $0x18] sm:$0xff] }
  0x17   : > { %272 = vperm.xlu1 %692, %v260_v1   ;;  %282 = vperm.xlu0 %691, %v262_v3   ;;  %s251_s25 = scalar_lea.vmem %s950_s0, %s632_s12  ;;  %p713_p0 = pneg %p712_p13 }
  0x18   : > { %v264_v6 = vld [vmem:[%s251_s25] sm:$0xff]  ;;  %s633_s25 = sshll.u32 %s778_s21, 7  ;;  %s790_s12 = smov [#allocation2]  }
  0x19   : > { %v286_v7 = vcombine.high %v264_v6, %v264_v6  ;;  %s534_s9 = scalar_lea.hbm %s955_s5, %s633_s25  ;;  %s714_s13 = sshll.u32 %s790_s12, 4  ;;  %s715_s13 = int_to_ptr.vmem [resolvable:$false] %s714_s13 }
  0x1a   : > { %s716_s21 = scalar_lea.vmem %s715_s13, 256  ;;  %p717_p1 = scmp.lt.s32.totalorder %s537_s29, %s715_s13 }
  0x1b   : > { %267 = vperm.xlu1 %692, %v259_v4   ;;  %277 = vperm.xlu0 %691, %v261_v5   ;;  %p718_p2 = scmp.lt.s32.totalorder %s716_s21, %s710_s11 }
  0x1c   : > { %620 = vmatprep.subr.msk.mxu0 %vm300_vm0, %v286_v7 }
  0x1d   : > { %621 = vmatpush1.msk.msra.mxu0 %vm300_vm0, %v264_v6  ;;  %p719_p3 = por %p718_p2, %p717_p1 }
  0x1e   : > { %622 = vmatmul.mubr.msk.f32.vlgmr.msra.gmra.mxu0 %vm287_vm1, %v254_v8 }
  0x1f   : > { %436 = vperm.xlu0 %691, %v263_v9   ;;  %375 = vmatprep.mubr.f32.mxu0 %v788_v0  ;;  %v258_v9 = vld [vmem:[%s953_s3] sm:$0xf]  ;;  %p720_p5 = pnand %p719_p3, %p713_p0 }
  0x22   : > { %623 = vmatmul.mubr.msk.f32.gmra.mxu0 %vm287_vm1, %v255_v10 }
  0x23   : > { %381 = vmatprep.mubr.f32.mxu0 %v788_v0 }
  0x26   : > { %624 = vmatmul.mubr.msk.f32.gmra.mxu0 %vm287_vm1, %v256_v11 }
  0x27   : > { %387 = vmatprep.mubr.f32.mxu0 %v788_v0 }
  0x2a   : > { %625 = vmatmul.mubr.msk.f32.gmra.mxu0 %vm287_vm1, %v257_v12 }
  0x92   : > { %v283_v14 = vpop.permute.xlu0 %282  ;;  %v273_v17 = vpop.permute.xlu1 %272 }
  0x96   : > { %v278_v20 = vpop.permute.xlu0 %277  ;;  %v268_v24 = vpop.permute.xlu1 %267 }
  0x9a   : > { %v437_v11 = vpop.permute.xlu0 %436 }
  0xde   : > { %v371_v13 = vpop.f32.mrf.mxu0 }
  0xdf   : > { %v372_v32 = vadd.f32 %v371_v13, %v268_v24 }
  0xe0   : > { %v373_v15 = vpop.f32.mrf.mxu0 }
  0xe1   : > { %v374_v29 = vadd.f32 %v373_v15, %v268_v24  ;;  %v402_v40 = vmul.f32 0.70710677, %v372_v32  ;;  %v394_v5 = vmul.f32 0.5, %v372_v32 }
  0xe2   : > { %v377_v16 = vpop.f32.mrf.mxu0 }
  0xe3   : > { %v378_v27 = vadd.f32 %v377_v16, %v273_v17  ;;  %v403_v38 = vmul.f32 0.70710677, %v374_v29  ;;  %v395_v3 = vmul.f32 0.5, %v374_v29 }
  0xe4   : > { %v379_v18 = vpop.f32.mrf.mxu0 }
  0xe5   : > { %v380_v19 = vadd.f32 %v379_v18, %v273_v17  ;;  %v404_v37 = vmul.f32 0.70710677, %v378_v27  ;;  %v396_v0 = vmul.f32 0.5, %v378_v27 }
  0xe6   : > { %v383_v21 = vpop.f32.mrf.mxu0 }
  0xe7   : > { %v384_v22 = vadd.f32 %v383_v21, %v278_v20  ;;  %v405_v25 = vmul.f32 0.70710677, %v380_v19  ;;  %v397_v61 = vmul.f32 0.5, %v380_v19 }
  0xe8   : > { %v385_v23 = vpop.f32.mrf.mxu0 }
  0xe9   : > { %v386_v26 = vadd.f32 %v385_v23, %v278_v20  ;;  %v406_v33 = vmul.f32 0.70710677, %v384_v22  ;;  %694 = verf.f32 %v405_v25  ;;  %v398_v58 = vmul.f32 0.5, %v384_v22 }
  0xea   : > { %v389_v28 = vpop.f32.mrf.mxu0 }
  0xeb   : > { %v407_v30 = vmul.f32 0.70710677, %v386_v26  ;;  %v390_v31 = vadd.f32 %v389_v28, %v283_v14  ;;  %v399_v55 = vmul.f32 0.5, %v386_v26 }
  0xec   : > { %v391_v34 = vpop.f32.mrf.mxu0 }
  0xed   : > { %v408_v35 = vmul.f32 0.70710677, %v390_v31  ;;  %v392_v36 = vadd.f32 %v391_v34, %v283_v14  ;;  %696 = verf.f32 %v407_v30  ;;  %v400_v52 = vmul.f32 0.5, %v390_v31 }
  0xef   : > { %698 = verf.f32 %v408_v35  ;;  %v409_v39 = vmul.f32 0.70710677, %v392_v36  ;;  %v401_v48 = vmul.f32 0.5, %v392_v36 }
  0xf0   : > { %700 = verf.f32 %v406_v33 }
  0xf1   : > { %702 = verf.f32 %v409_v39 }
  0xf2   : > { %704 = verf.f32 %v404_v37 }
  0xf3   : > { %706 = verf.f32 %v403_v38 }
  0xf4   : > { %708 = verf.f32 %v402_v40 }
  0xf6   : > { %v695_v41 = vpop.eup %694 }
  0xf7   : > { %v421_v57 = vadd.f32 1.0, %v695_v41 }
  0xf9   : > { %v429_v4 = vmul.f32 %v421_v57, %v397_v61 }
  0xfa   : > { %v697_v42 = vpop.eup %696 }
  0xfb   : > { %v423_v50 = vadd.f32 1.0, %v697_v42 }
  0xfc   : > { %v699_v43 = vpop.eup %698 }
  0xfd   : > { %v701_v44 = vpop.eup %700  ;;  %v424_v46 = vadd.f32 1.0, %v699_v43  ;;  %v431_v62 = vmul.f32 %v423_v50, %v399_v55 }
  0xfe   : > { %v703_v45 = vpop.eup %702  ;;  %v422_v53 = vadd.f32 1.0, %v701_v44 }
  0xff   : > { %v705_v47 = vpop.eup %704  ;;  %v425_v49 = vadd.f32 1.0, %v703_v45  ;;  %v432_v59 = vmul.f32 %v424_v46, %v400_v52 }
 0x100   : > { %v707_v51 = vpop.eup %706  ;;  %v420_v60 = vadd.f32 1.0, %v705_v47  ;;  %v430_v1 = vmul.f32 %v422_v53, %v398_v58 }
 0x101   : > { %v709_v54 = vpop.eup %708  ;;  %v433_v56 = vmul.f32 %v425_v49, %v401_v48  ;;  %v419_v63 = vadd.f32 1.0, %v707_v51 }
 0x102   : > { %v418_v2 = vadd.f32 1.0, %v709_v54  ;;  %v428_v6 = vmul.f32 %v420_v60, %v396_v0 }
 0x103   : > { %467 = vmatprep.subr.mxu1 %v433_v56  ;;  %v427_v7 = vmul.f32 %v419_v63, %v395_v3 }
 0x104   : > { %468 = vmatpush1.msra.mxu1 %v432_v59  ;;  %v426_v8 = vmul.f32 %v418_v2, %v394_v5 }
 0x105   : > { %469 = vmatprep.subr.mxu1 %v431_v62 }
 0x106   : > { %470 = vmatpush1.msra.mxu1 %v430_v1 }
 0x107   : > { %471 = vmatprep.subr.mxu1 %v429_v4 }
 0x108   : > { %472 = vmatpush1.msra.mxu1 %v428_v6 }
 0x109   : > { %473 = vmatprep.subr.mxu1 %v427_v7 }
 0x10a   : > { %474 = vmatpush1.msra.mxu1 %v426_v8 }
 0x10b   : > { %626 = vmatmul.mubr.msk.f32.vlgmr.msra.gmra.mxu1 %vm439_vm2, %v258_v9 }
 0x1cb   : > { %v509_v10 = vpop.f32.mrf.mxu1 }
 0x1cc   : > { %v510_v13 = vadd.f32 %v509_v10, %v437_v11 }
 0x1cd   : > { %v511_v12 = vpop.f32.mrf.mxu1 }
 0x1ce   : > { %v512_v14 = vadd.f32 %v511_v12, %v437_v11 }
 0x1d0   : > { %v516_v15 = vcombine.low %v510_v13, %v512_v14 }
 0x1d2   : > { %518 = vst [vmem:[%s242_s27] sm:$0xff] %v516_v15 }
 0x1d3   : > { %723 = shalt.err (!%p720_p5)
}
 0x1d4   : > { %s724_s14 = scalar_lea.hbm %s534_s9, 128  ;;  %s728_s17 = scalar_lea.hbm %s955_s5, 256 }
 0x1d5   : > { %p725_p6 = scmp.ne.s32.totalorder %s534_s9, %s724_s14  ;;  %p729_p10 = scmp.lt.s32.totalorder %s534_s9, %s955_s5 }
 0x1d6   : > { %p730_p11 = scmp.lt.s32.totalorder %s728_s17, %s724_s14 }
 0x1d7   : > { %p726_p7 = pnand %p725_p6, %p861_p4 }
 0x1d8   : > { %p731_p12 = por %p730_p11, %p729_p10 }
 0x1d9   : > { %p727_p9 = pneg %p726_p7 }
 0x1db   : > { %p732_p13 = pnand %p731_p12, %p727_p9 }
 0x1dd   : > { %735 = shalt.err (!%p732_p13)
}
 0x1de   : > { %634 = dma.vmem_to_hbm [thread:$0]  (%p861_p4), %s537_s29, 128, %s534_s9, %s520_s10  }
 0x1df PF: > { %p640_p0 = scmp.ge.s32.totalorder %s786_s23, 2  ;;  %s548_s27 = sand.u32 1, %s766_s18  }
 0x1e0   : > { %s549_s7 = scalar_lea.sflag [#allocation3], %s548_s27 }
 0x1e1   : > { %p637_p1 = pnand %p640_p0, %p868_p8 }
 0x1e3   : > { %p638_p2 = pneg %p637_p1 }
 0x1e5   : > { %761 = dma.done.wait (%p638_p2), %s549_s7, 128  }
 0x1e6   : > { %763 = vsyncadd (%p638_p2), %s549_s7, 4294967168  ;;  %s18_s23 = sadd.s32 1, %s786_s23   ;;  %s958_s18 = smov %s770_s19 }
 0x1e7   : > { %p15_p3 = scmp.ge.s32.totalorder %s18_s23, 4   ;;  %s959_s19 = smov %s774_s20 }
 0x1e8   : > { %s960_s20 = smov %s874_s6  ;;  %s961_s21 = smov %s782_s22 }
 0x1e9   : > { %s962_s22 = smov %s964_s26  ;;  %17 = sbr.rel (!%p15_p3) target bundleno = 4 (0x4), region = 75 }
 0x1ee   :  { %554 = vsyncpa [#allocation3], 1 }
 0x1ef   :  { %556 = vsyncpa [#allocation3 + $0x1], 1 }

</bundles_post_ra>
